<compile_context>
chip_gen: v7x
topology: tpu7x:2x2x1
jax: 0.10.0
libtpu: 0.0.40
codegen_flags: <defaults>
</compile_context>

<pallas_src>
import jax
import jax.numpy as jnp
from jax.experimental import pallas as pl
from jax.experimental.pallas import tpu as pltpu


# -----------------------------------------------------------------------------
# Preferred identity path: zero-cost Python short-circuit.
# -----------------------------------------------------------------------------
def passthrough_bev(x: jax.Array) -> jax.Array:
    """Identity over the BEV feature map: zero bytes moved, zero launch cost."""
    return x


# -----------------------------------------------------------------------------
# Materialized copy: direct HBM -> HBM DMA (no VMEM staging).
# -----------------------------------------------------------------------------
def _dma_copy_kernel(x_hbm, o_hbm, sem):
    # Whole-array DMA: issue and wait. No vreg traffic, no VMEM budget.
    copy = pltpu.make_async_copy(x_hbm, o_hbm, sem)
    copy.start()
    copy.wait()


def passthrough_bev_copy(x: jax.Array) -> jax.Array:
    """Explicit identity copy into a fresh buffer via a single HBM->HBM DMA."""
    itemsize = jnp.dtype(x.dtype).itemsize
    return pl.pallas_call(
        _dma_copy_kernel,
        out_shape=jax.ShapeDtypeStruct(x.shape, x.dtype),
        in_specs=[pl.BlockSpec(memory_space=pl.ANY)],
        out_specs=pl.BlockSpec(memory_space=pl.ANY),
        scratch_shapes=[pltpu.SemaphoreType.DMA],
        cost_estimate=pl.CostEstimate(
            flops=0,
            transcendentals=0,
            bytes_accessed=2 * x.size * itemsize,
        ),
    )(x)


class PassThrough:
    """JAX mirror of OpenPCDet's PassThrough map_to_bev module.

    Holds no parameters; forward(batch_dict) returns batch_dict unchanged,
    exactly like the PyTorch module. Use `passthrough_bev_copy` if a
    materialized (fresh-buffer) copy of a tensor is explicitly needed.
    """

    def __init__(self, model_cfg, **kwargs):
        self.model_cfg = model_cfg
        self.num_bev_features = model_cfg["NUM_BEV_FEATURES"]

    def forward(self, batch_dict, **kwargs):
        # Exact semantics of the original module: pure passthrough.
        return batch_dict


if __name__ == "__main__":
    key = jax.random.PRNGKey(0)
    B, C, H, W = 2, 4, 16, 16  # small shapes; C == NUM_BEV_FEATURES

    model_cfg = {"NUM_BEV_FEATURES": C}
    module = PassThrough(model_cfg)

    k1, k2 = jax.random.split(key)
    spatial_features = jax.random.normal(k1, (B, C, H, W), dtype=jnp.float32)
    points = jax.random.normal(k2, (32, 4), dtype=jnp.float32)

    batch_dict = {
        "batch_size": B,
        "spatial_features": spatial_features,
        "points": points,
    }

    # Forward: identical semantics to the PyTorch module (pure passthrough).
    out_dict = module.forward(batch_dict)
    assert out_dict is batch_dict
    assert out_dict["spatial_features"] is spatial_features
    assert out_dict["points"] is points
    assert out_dict["batch_size"] == B

    # Zero-cost identity path for the BEV tensor.
    ident = passthrough_bev(spatial_features)
    assert ident is spatial_features

    # Materialized-copy variant: run the Pallas HBM->HBM DMA kernel once.
    out_copy = jax.block_until_ready(passthrough_bev_copy(spatial_features))
    assert out_copy.shape == spatial_features.shape
    assert out_copy.dtype == spatial_features.dtype
    assert bool(jnp.array_equal(out_copy, spatial_features))

    print("KERNEL_OK")
</pallas_src>

<mosaic_0001>
module attributes {stable_mosaic.version = 11 : i64} {
  func.func @_dma_copy_kernel(%arg0: memref<2x4x16x16xf32, #tpu.memory_space<any>>, %arg1: memref<2x4x16x16xf32, #tpu.memory_space<any>>, %arg2: memref<!tpu.dma_semaphore, #tpu.memory_space<semaphore_mem>>) attributes {dimension_semantics = [], scalar_prefetch = 0 : i64, scratch_operands = 1 : i64, tpu.core_type = #tpu.core_type<tc>} {
    tpu.enqueue_dma source(%arg0 : memref<2x4x16x16xf32, #tpu.memory_space<any>>) target(%arg1 : memref<2x4x16x16xf32, #tpu.memory_space<any>>) target_semaphore(%arg2 : memref<!tpu.dma_semaphore, #tpu.memory_space<semaphore_mem>>)
    tpu.wait_dma2 semaphore(%arg2 : memref<!tpu.dma_semaphore, #tpu.memory_space<semaphore_mem>>) src(%arg0 : memref<2x4x16x16xf32, #tpu.memory_space<any>>) dst(%arg1 : memref<2x4x16x16xf32, #tpu.memory_space<any>>)
    return
  }
}

</mosaic_0001>

<bundles_post_ra>
// kernel: tpu_custom_call.1
= control target key start
LH: loop header
LB: loop body
LE: loop exit
PB: predicated region body
PF: predicated region fallthrough
CT: control target
= control target key end

     0   :  { %s36_s6 = smov [#allocation2]   ;;  %s37_s7 = smov [#allocation3]   ;;  %s55_s0 = inlined_call_operand.hbm [shape: f32[2,4,16,16], index: 0, kind: input, shape index: {}]   ;;  %s56_s1 = inlined_call_operand.hbm [shape: f32[2,4,16,16], index: 1, kind: output, shape index: {}]  }
   0x1   :  { %s38_s8 = smov 0  }
   0x2   :  { %18 = dma.general %s55_s0, 2048, %s56_s1, %s36_s6, %s37_s7, [#allocation4], %s38_s8, 0  }
   0x3   :  { %34 = dma.done.wait [#allocation2], 2048 }
   0x4   :  { %35 = vsyncadd [#allocation2], 4294965248 }
   0x5   :  { %24 = vsyncmov [#allocation2] }
   0x8   :  { %s25_s13 = vpop.sfrf %24 }
   0x9   :  { %p30_p0 = scmp.ne.s32.totalorder %s25_s13, 0 }
   0xb   :  { %29 = shalt.err (%p30_p0)  }

</bundles_post_ra>
